<compile_context>
chip_gen: v7x
topology: tpu7x:2x2x1
jax: 0.10.0
libtpu: 0.0.40
codegen_flags: <defaults>
</compile_context>

<pallas_src>
import jax
import jax.numpy as jnp
from jax.experimental import pallas as pl
from jax.experimental.pallas import tpu as pltpu


def _row_stats_kernel(wg_ref, ws_ref, p_ref, y_ref, stats_ref, dpart_ref):
    # wg_ref, ws_ref: (1, TM)   weight chunks with the 1/M spatial-mean factor folded in
    # p_ref, y_ref:   (TN, TM)  row-tile / column-chunk, native dtype (cast here, not in wrapper)
    # stats_ref:      (TN, 128) lane 0 = sum(p*wg), lane 1 = sum(y*wg), lane 2 = sum(y*ws);
    #                 accumulated across column chunks (grid axis 1, "arbitrary")
    # dpart_ref:      (1, 1, TM) this grid step's partial column sum of (pred - y)
    j = pl.program_id(1)

    @pl.when(j == 0)
    def _():
        stats_ref[...] = jnp.zeros_like(stats_ref)

    p = p_ref[...].astype(jnp.float32)
    yv = y_ref[...].astype(jnp.float32)
    wg = wg_ref[...]
    ws = ws_ref[...]

    sp_g = jnp.sum(p * wg, axis=-1, keepdims=True)    # (TN, 1)
    sy_g = jnp.sum(yv * wg, axis=-1, keepdims=True)
    sy_s = jnp.sum(yv * ws, axis=-1, keepdims=True)

    lane = jax.lax.broadcasted_iota(jnp.int32, stats_ref.shape, 1)
    contrib = jnp.where(lane == 0, sp_g,
              jnp.where(lane == 1, sy_g,
              jnp.where(lane == 2, sy_s, jnp.float32(0.0))))
    stats_ref[...] += contrib

    dpart_ref[...] = jnp.sum(p - yv, axis=0, keepdims=True)[None]


def _pick_tiles(n_rows, m, itemsize):
    """Row/column tile sizes + a VMEM limit, sized from the actual chip's VMEM.

    Working-set accounting per streamed element:
        4*itemsize   pred + y native tiles, double buffered by the pipeline
      + 12           f32 casts of pred/y + one product temporary inside the kernel
    """
    try:
        vmem_cap = int(pltpu.get_tpu_info().vmem_capacity_bytes)
    except Exception:
        vmem_cap = 64 * 1024 * 1024          # conservative default (v7x per-TC VMEM)

    per_elem = 4 * itemsize + 12
    # ~45% of VMEM for the streamed working set -> ~4 MiB/input tile on v7x (64 MiB),
    # ~8 MiB/input tile on v5e/v6e (128 MiB), leaving ample headroom for outputs/compiler scratch.
    budget = min(int(vmem_cap * 0.45), 56 * 1024 * 1024)

    # Column chunk: keep the full row unless even ~64 rows of it would blow the budget.
    tm = m
    if m % 128 == 0 and budget // (m * per_elem) < 64:
        max_cols = max(128, budget // (128 * per_elem))   # aim for >=128-row tiles
        best = 128
        d = 128
        while d <= max_cols:
            if m % d == 0:
                best = d
            d += 128
        tm = best
    # TODO(synk): if M is huge and NOT a multiple of 128, tm stays == M and tn clamps to 8;
    # an in-kernel fori_loop over padded lane chunks would keep big row tiles in that case.

    # Row tile: largest multiple-of-8 divisor of n_rows within budget, preferring an even
    # grid length >= 4 so both v7x TensorCores get balanced work (no effect on v5e/v6e).
    cap_rows = min(n_rows, max(8, (budget // max(tm * per_elem, 1)) // 8 * 8))
    cands = [d for d in range(8, cap_rows + 1, 8) if n_rows % d == 0]
    if not cands:
        tn = n_rows
    else:
        def key(d):
            g = n_rows // d
            return (g >= 4 and g % 2 == 0, g >= 2, d)
        tn = max(cands, key=key)

    footprint = (per_elem * tn * tm          # streamed tiles (double-buffered) + f32 temps
                 + 2 * tn * 128 * 4          # stats output block (double buffered)
                 + 2 * tm * 4                # dpart output block
                 + 4 * tm * 4)               # the two weight rows
    vmem_limit = int(min(max(2 * footprint, 16 * 1024 * 1024), vmem_cap * 3 // 4))
    vmem_limit = max(vmem_limit, min(footprint + (1 << 20), int(vmem_cap * 0.9)))
    return tn, tm, vmem_limit


def nrmse_climatebench(pred, y, deg2rad: bool = True, alpha: float = 5.0):
    assert pred.shape == y.shape and pred.ndim == 4
    B, T, H, W = y.shape
    N, M = B * T, H * W

    # --- weights over the last ("latitude") dim, matching the two torch sub-modules ---
    idx = jnp.arange(W, dtype=jnp.float32)
    w_g = jnp.cos(jnp.pi * idx / 180.0) if deg2rad else jnp.cos(idx)           # NRMSE_g weights
    lats = jnp.linspace(-90.0, 90.0, W, dtype=jnp.float32)
    w_s = jnp.cos(jnp.pi * lats / 180.0) if deg2rad else jnp.cos(lats)         # NRMSE_s weights

    # broadcast over H, flatten to the lane axis, fold in the 1/M spatial-mean factor.
    inv_m = jnp.float32(1.0 / M)
    wg_full = (jnp.broadcast_to(w_g[None, :], (H, W)).reshape(1, M) * inv_m).astype(jnp.float32)
    ws_full = (jnp.broadcast_to(w_s[None, :], (H, W)).reshape(1, M) * inv_m).astype(jnp.float32)

    # keep native dtype (no wrapper upcast -> no extra HBM pass); kernel casts on load.
    xp = pred.reshape(N, M)
    xy = y.reshape(N, M)

    # pad rows to a multiple of 8 (zero rows contribute 0 to every accumulated quantity).
    n_pad = max(8, -(-N // 8) * 8)
    if n_pad != N:
        xp = jnp.pad(xp, ((0, n_pad - N), (0, 0)))
        xy = jnp.pad(xy, ((0, n_pad - N), (0, 0)))

    itemsize = jnp.dtype(pred.dtype).itemsize
    TN, TM, vmem_limit = _pick_tiles(n_pad, M, itemsize)
    Gr, Gc = n_pad // TN, M // TM

    stats, dpart = pl.pallas_call(
        _row_stats_kernel,
        out_shape=(
            jax.ShapeDtypeStruct((n_pad, 128), jnp.float32),
            jax.ShapeDtypeStruct((Gr, 1, M), jnp.float32),
        ),
        grid=(Gr, Gc),
        in_specs=[
            pl.BlockSpec((1, TM), lambda i, j: (0, j)),        # w_g (shared, tiny)
            pl.BlockSpec((1, TM), lambda i, j: (0, j)),        # w_s (shared, tiny)
            pl.BlockSpec((TN, TM), lambda i, j: (i, j)),       # pred tile
            pl.BlockSpec((TN, TM), lambda i, j: (i, j)),       # y tile
        ],
        out_specs=(
            pl.BlockSpec((TN, 128), lambda i, j: (i, 0)),      # lane-dense packed row stats
            pl.BlockSpec((1, 1, TM), lambda i, j: (i, 0, j)),  # partial column sums of (p - y)
        ),
        compiler_params=pltpu.CompilerParams(
            dimension_semantics=("parallel", "arbitrary"),
            vmem_limit_bytes=vmem_limit,
        ),
    )(wg_full, ws_full, xp, xy)

    sp_g = stats[:N, 0].reshape(B, T)
    sy_g = stats[:N, 1].reshape(B, T)
    sy_s = stats[:N, 2].reshape(B, T)

    # ---- NRMSE_g (square intentionally only on wgm_g(y.mean(0)), as in the torch code) ----
    denom_g = jnp.mean(sy_g)
    pm = jnp.mean(sp_g, axis=0)                       # == wgm_g(pred.mean(dim=0)), (T,)
    ym = jnp.mean(sy_g, axis=0)                       # == wgm_g(y.mean(dim=0)),   (T,)
    nrmse_g = jnp.sqrt(jnp.mean(pm - ym * ym)) / denom_g

    # ---- NRMSE_s ----
    denom_s = jnp.mean(sy_s)
    d_mean = jnp.sum(dpart.reshape(Gr, M), axis=0) / N   # pred.mean((0,1)) - y.mean((0,1)), flat
    nrmse_s = jnp.sqrt(jnp.sum(d_mean * d_mean * ws_full[0])) / denom_s

    return nrmse_s + alpha * nrmse_g


def _reference(pred, y, deg2rad: bool = True, alpha: float = 5.0):
    """Pure-JAX transcription of the PyTorch module, for correctness checking."""
    B, T, H, W = y.shape
    idx = jnp.arange(W, dtype=jnp.float32)
    w_g = jnp.cos(jnp.pi * idx / 180.0) if deg2rad else jnp.cos(idx)
    lats = jnp.linspace(-90.0, 90.0, W, dtype=jnp.float32)
    w_s = jnp.cos(jnp.pi * lats / 180.0) if deg2rad else jnp.cos(lats)

    def wgm(x, w):
        return jnp.mean(x * w, axis=(-1, -2))

    p32 = pred.astype(jnp.float32)
    y32 = y.astype(jnp.float32)
    denom_g = jnp.mean(wgm(y32, w_g))
    nrmse_g = jnp.sqrt(jnp.mean(wgm(p32.mean(0), w_g) - wgm(y32.mean(0), w_g) ** 2)) / denom_g
    denom_s = jnp.mean(wgm(y32, w_s))
    nrmse_s = jnp.sqrt(wgm((p32.mean((0, 1)) - y32.mean((0, 1))) ** 2, w_s)) / denom_s
    return nrmse_s + alpha * nrmse_g


if __name__ == "__main__":
    key = jax.random.PRNGKey(0)
    k1, k2 = jax.random.split(key)
    B, T, H, W = 2, 8, 8, 16
    # The torch module squares only wgm_g(y.mean(0)), so for y ~ pred the nrmse_g sqrt argument
    # can be negative (NaN).  We preserve that behaviour; for the smoke test pick y well below
    # pred so wgm_g(pred.mean(0)) > wgm_g(y.mean(0))**2 and everything stays finite.
    pred = jax.random.uniform(k1, (B, T, H, W), jnp.float32, minval=0.5, maxval=1.5)
    y = jax.random.uniform(k2, (B, T, H, W), jnp.float32, minval=0.05, maxval=0.25)

    loss = nrmse_climatebench(pred, y)
    jax.block_until_ready(loss)

    ref = _reference(pred, y)
    assert jnp.isfinite(loss), loss
    assert jnp.allclose(loss, ref, rtol=1e-5, atol=1e-6), (float(loss), float(ref))
    print("KERNEL_OK")
</pallas_src>

<mosaic_0001>
module attributes {stable_mosaic.version = 11 : i64} {
  func.func @_row_stats_kernel(%arg0: i32, %arg1: i32, %arg2: memref<1x128xf32, #tpu.memory_space<vmem>>, %arg3: memref<1x128xf32, #tpu.memory_space<vmem>>, %arg4: memref<8x128xf32, #tpu.memory_space<vmem>>, %arg5: memref<8x128xf32, #tpu.memory_space<vmem>>, %arg6: memref<8x128xf32, #tpu.memory_space<vmem>>, %arg7: memref<1x1x128xf32, #tpu.memory_space<vmem>>) attributes {dimension_semantics = [#tpu.dimension_semantics<parallel>, #tpu.dimension_semantics<arbitrary>], iteration_bounds = array<i64: 2, 1>, scalar_prefetch = 0 : i64, scratch_operands = 0 : i64, tpu.core_type = #tpu.core_type<tc>, window_params = [{transform_indices = @transform_0, window_bounds = array<i64: 1, 128>}, {transform_indices = @transform_1, window_bounds = array<i64: 1, 128>}, {transform_indices = @transform_2, window_bounds = array<i64: 8, 128>}, {transform_indices = @transform_3, window_bounds = array<i64: 8, 128>}, {transform_indices = @transform_4, window_bounds = array<i64: 8, 128>}, {transform_indices = @transform_5, window_bounds = array<i64: 1, 1, 128>}]} {
    %c0_i32 = arith.constant 0 : i32
    %0 = arith.cmpi eq, %arg1, %c0_i32 : i32
    %1 = arith.extui %0 : i1 to i32
    %c0_i32_0 = arith.constant 0 : i32
    %2 = arith.cmpi ne, %1, %c0_i32_0 : i32
    scf.if %2 {
      %cst_20 = arith.constant 0.000000e+00 : f32
      %44 = vector.broadcast %cst_20 : f32 to vector<8x128xf32>
      %c0_21 = arith.constant 0 : index
      %c0_22 = arith.constant 0 : index
      %45 = vector.load %arg6[%c0_21, %c0_22] : memref<8x128xf32, #tpu.memory_space<vmem>>, vector<8x128xf32>
      tpu.vector_store %arg6[%c0_21, %c0_22], %44 {strides = array<i32>} : memref<8x128xf32, #tpu.memory_space<vmem>>, vector<8x128xf32>,
    } else {
    }
    %c0 = arith.constant 0 : index
    %c0_1 = arith.constant 0 : index
    %3 = vector.load %arg4[%c0, %c0_1] : memref<8x128xf32, #tpu.memory_space<vmem>>, vector<8x128xf32>
    %c0_2 = arith.constant 0 : index
    %c0_3 = arith.constant 0 : index
    %4 = vector.load %arg5[%c0_2, %c0_3] : memref<8x128xf32, #tpu.memory_space<vmem>>, vector<8x128xf32>
    %c0_4 = arith.constant 0 : index
    %c0_5 = arith.constant 0 : index
    %5 = vector.load %arg2[%c0_4, %c0_5] : memref<1x128xf32, #tpu.memory_space<vmem>>, vector<1x128xf32>
    %c0_6 = arith.constant 0 : index
    %c0_7 = arith.constant 0 : index
    %6 = vector.load %arg3[%c0_6, %c0_7] : memref<1x128xf32, #tpu.memory_space<vmem>>, vector<1x128xf32>
    %7 = vector.broadcast %5 : vector<1x128xf32> to vector<8x128xf32>
    %8 = arith.mulf %3, %7 : vector<8x128xf32>
    %cst = arith.constant dense<0.000000e+00> : vector<8xf32>
    %9 = vector.multi_reduction <add>, %8, %cst [1] : vector<8x128xf32> to vector<8xf32>
    %10 = vector.shape_cast %9 : vector<8xf32> to vector<8x1xf32>
    %11 = vector.broadcast %5 : vector<1x128xf32> to vector<8x128xf32>
    %12 = arith.mulf %4, %11 : vector<8x128xf32>
    %cst_8 = arith.constant dense<0.000000e+00> : vector<8xf32>
    %13 = vector.multi_reduction <add>, %12, %cst_8 [1] : vector<8x128xf32> to vector<8xf32>
    %14 = vector.shape_cast %13 : vector<8xf32> to vector<8x1xf32>
    %15 = vector.broadcast %6 : vector<1x128xf32> to vector<8x128xf32>
    %16 = arith.mulf %4, %15 : vector<8x128xf32>
    %cst_9 = arith.constant dense<0.000000e+00> : vector<8xf32>
    %17 = vector.multi_reduction <add>, %16, %cst_9 [1] : vector<8x128xf32> to vector<8xf32>
    %18 = vector.shape_cast %17 : vector<8xf32> to vector<8x1xf32>
    %19 = tpu.iota {dimensions = array<i32: 1>} : vector<8x128xi32>
    %c0_i32_10 = arith.constant 0 : i32
    %20 = vector.broadcast %c0_i32_10 : i32 to vector<8x128xi32>
    %21 = arith.cmpi eq, %19, %20 : vector<8x128xi32>
    %c1_i32 = arith.constant 1 : i32
    %22 = vector.broadcast %c1_i32 : i32 to vector<8x128xi32>
    %23 = arith.cmpi eq, %19, %22 : vector<8x128xi32>
    %c2_i32 = arith.constant 2 : i32
    %24 = vector.broadcast %c2_i32 : i32 to vector<8x128xi32>
    %25 = arith.cmpi eq, %19, %24 : vector<8x128xi32>
    %cst_11 = arith.constant 0.000000e+00 : f32
    %26 = vector.shape_cast %18 : vector<8x1xf32> to vector<8x1xf32>
    %27 = vector.broadcast %26 : vector<8x1xf32> to vector<8x128xf32>
    %28 = vector.broadcast %cst_11 : f32 to vector<8x128xf32>
    %29 = arith.select %25, %27, %28 : vector<8x128xi1>, vector<8x128xf32>
    %30 = vector.shape_cast %14 : vector<8x1xf32> to vector<8x1xf32>
    %31 = vector.broadcast %30 : vector<8x1xf32> to vector<8x128xf32>
    %32 = arith.select %23, %31, %29 : vector<8x128xi1>, vector<8x128xf32>
    %33 = vector.shape_cast %10 : vector<8x1xf32> to vector<8x1xf32>
    %34 = vector.broadcast %33 : vector<8x1xf32> to vector<8x128xf32>
    %35 = arith.select %21, %34, %32 : vector<8x128xi1>, vector<8x128xf32>
    %c0_12 = arith.constant 0 : index
    %c0_13 = arith.constant 0 : index
    %36 = vector.load %arg6[%c0_12, %c0_13] : memref<8x128xf32, #tpu.memory_space<vmem>>, vector<8x128xf32>
    %37 = arith.addf %36, %35 : vector<8x128xf32>
    %c0_14 = arith.constant 0 : index
    %c0_15 = arith.constant 0 : index
    %38 = vector.load %arg6[%c0_14, %c0_15] : memref<8x128xf32, #tpu.memory_space<vmem>>, vector<8x128xf32>
    tpu.vector_store %arg6[%c0_14, %c0_15], %37 {strides = array<i32>} : memref<8x128xf32, #tpu.memory_space<vmem>>, vector<8x128xf32>,
    %39 = arith.subf %3, %4 : vector<8x128xf32>
    %cst_16 = arith.constant dense<0.000000e+00> : vector<128xf32>
    %40 = vector.multi_reduction <add>, %39, %cst_16 [0] : vector<8x128xf32> to vector<128xf32>
    %41 = vector.shape_cast %40 : vector<128xf32> to vector<1x128xf32>
    %42 = vector.shape_cast %41 : vector<1x128xf32> to vector<1x1x128xf32>
    %c0_17 = arith.constant 0 : index
    %c0_18 = arith.constant 0 : index
    %c0_19 = arith.constant 0 : index
    %43 = vector.load %arg7[%c0_17, %c0_18, %c0_19] : memref<1x1x128xf32, #tpu.memory_space<vmem>>, vector<1x1x128xf32>
    tpu.vector_store %arg7[%c0_17, %c0_18, %c0_19], %42 {strides = array<i32>} : memref<1x1x128xf32, #tpu.memory_space<vmem>>, vector<1x1x128xf32>,
    return
  }
  func.func @transform_0(%arg0: i32, %arg1: i32) -> (i32, i32) {
    %c0_i32 = arith.constant 0 : i32
    %c0_i32_0 = arith.constant 0 : i32
    return %c0_i32, %arg1 : i32, i32
  }
  func.func @transform_1(%arg0: i32, %arg1: i32) -> (i32, i32) {
    %c0_i32 = arith.constant 0 : i32
    %c0_i32_0 = arith.constant 0 : i32
    return %c0_i32, %arg1 : i32, i32
  }
  func.func @transform_2(%arg0: i32, %arg1: i32) -> (i32, i32) {
    %c0_i32 = arith.constant 0 : i32
    return %arg0, %arg1 : i32, i32
  }
  func.func @transform_3(%arg0: i32, %arg1: i32) -> (i32, i32) {
    %c0_i32 = arith.constant 0 : i32
    return %arg0, %arg1 : i32, i32
  }
  func.func @transform_4(%arg0: i32, %arg1: i32) -> (i32, i32) {
    %c0_i32 = arith.constant 0 : i32
    %c0_i32_0 = arith.constant 0 : i32
    return %arg0, %c0_i32 : i32, i32
  }
  func.func @transform_5(%arg0: i32, %arg1: i32) -> (i32, i32, i32) {
    %c0_i32 = arith.constant 0 : i32
    %c0_i32_0 = arith.constant 0 : i32
    return %arg0, %c0_i32, %arg1 : i32, i32, i32
  }
}

</mosaic_0001>

<bundles_post_ra>
// kernel: tpu_custom_call.1
= control target key start
LH: loop header
LB: loop body
LE: loop exit
PB: predicated region body
PF: predicated region fallthrough
CT: control target
= control target key end

     0   :  { %s1207_s0 = inlined_call_operand.hbm [shape: f32[1,128], index: 0, kind: input, shape index: {}]   ;;  %s1208_s1 = inlined_call_operand.vmem [shape: f32[1,128], index: 1, kind: input, shape index: {}]   ;;  %s1209_s2 = inlined_call_operand.hbm [shape: f32[16,128], index: 2, kind: input, shape index: {}]   ;;  %s1210_s3 = inlined_call_operand.hbm [shape: f32[16,128], index: 3, kind: input, shape index: {}]   ;;  %s1211_s4 = inlined_call_operand.hbm [shape: f32[16,128], index: 4, kind: output, shape index: {0}]   ;;  %s1212_s5 = inlined_call_operand.hbm [shape: f32[2,1,128], index: 5, kind: output, shape index: {1}]  }
   0x1   :  { %1219 = sst [smem:[#allocation16_spill]] %s1209_s2 }
   0x2   :  { %11 = vsyncpa [#allocation3], 0 }
   0x3   :  { %12 = vsyncpa [#allocation6], 0 }
   0x4   :  { %14 = vsyncpa [#allocation6 + $0x1], 0 }
   0x5   :  { %15 = vsyncpa [#allocation4], 0 }
   0x6   :  { %17 = vsyncpa [#allocation4 + $0x1], 0 }
   0x7   :  { %18 = vsyncpa [#allocation10], 0 }
   0x8   :  { %20 = vsyncpa [#allocation10 + $0x1], 0  ;;  %s923_s18 = smov 0   ;;  %s925_s19 = smov 0  }
   0x9   :  { %s927_s20 = smov 0   ;;  %s929_s21 = smov 0  }
   0xa   :  { %s931_s22 = smov 0   ;;  %s933_s23 = smov 0  }
   0xb LB: > { %s38_s24 = sadd.s32 1, %s882_s22  ;;  %s99_s25 = sadd.s32 1, %s874_s20  ;;  %s886_s23 = sphi %s933_s23, %s26_s23   ;;  %s882_s22 = sphi %s931_s22, %s1243_s22   ;;  %s878_s21 = sphi %s929_s21, %s1242_s21   ;;  %s874_s20 = sphi %s927_s20, %s1241_s20   ;;  %s870_s19 = sphi %s925_s19, %s1240_s19   ;;  %s866_s18 = sphi %s923_s18, %s1239_s18  }
   0xc   : > { %p40_p0 = scmp.ge.s32.totalorder %s38_s24, 2  ;;  %p106_p1 = scmp.ne.s32.totalorder %s874_s20, %s870_s19 }
   0xd   : > { %p107_p2 = scmp.eq.s32.totalorder %s886_s23, 0  ;;  %p627_p5 = scmp.lt.s32.totalorder %s886_s23, 2 }
   0xe   : > { %s1245_s24 = smov (%p40_p0, %s38_s24), 0  ;;  %s237_s27 = sand.u32 1, %s886_s23  }
   0xf   : > { %1220 = sst [smem:[#allocation15_spill]] %s1245_s24  ;;  %p108_p4 = por %p107_p2, %p106_p1 }
  0x10   : > { %s94_s26 = ssub.s32 %s882_s22, %s1245_s24  ;;  %s239_s28 = sand.u32 1, %s874_s20  }
  0x11   : > { %p97_p6 = scmp.eq.s32.totalorder %s94_s26, 0  ;;  %s581_s29 = sshll.u32 %s882_s22, 7 }
  0x12   : > { %s973_s6 = sshll.u32 %s239_s28, 3  ;;  %s1221_s2 = sld [smem:[#allocation16_spill]] }
  0x13   : > { %s971_s30 = scalar_select %p97_p6, %s874_s20, %s99_s25  }
  0x14   : > { %p982_p7 = pnand %p627_p5, %p108_p4  ;;  %s241_s11 = scalar_lea.vmem [#allocation5], %s973_s6 }
  0x15   : > { %s249_s12 = sshll.u32 %s241_s11, 4  ;;  %s989_s13 = scalar_lea.sflag [#allocation6], %s237_s27  ;;  %s987_s12 = int_to_ptr.vmem [resolvable:$true] %s249_s12 }
  0x16   : > { %p682_p9 = pneg %p982_p7 }
  0x18   : > { %s980_s9 = scalar_lea.hbm %s1221_s2, %s581_s29  ;;  %s685_s17 = scalar_lea.hbm %s1221_s2, 256 }
  0x19   : > { %s680_s14 = scalar_lea.hbm %s980_s9, 128  ;;  %p686_p12 = scmp.lt.u32.totalorder %s980_s9, %s1221_s2 }
  0x1a   : > { %p681_p8 = scmp.ne.s32.totalorder %s980_s9, %s680_s14  ;;  %p687_p13 = scmp.lt.u32.totalorder %s685_s17, %s680_s14 }
  0x1b   : > { %p689_p2 = scmp.lt.u32.totalorder %s680_s14, %s980_s9 }
  0x1c   : > { %p683_p10 = pnand %p682_p9, %p681_p8  ;;  %p688_p0 = por %p687_p13, %p686_p12 }
  0x1e   : > { %p684_p11 = pneg %p683_p10  ;;  %p690_p4 = por %p689_p2, %p688_p0 }
  0x20   : > { %p691_p5 = pnand %p690_p4, %p684_p11 }
  0x22   : > { %694 = shalt.err (!%p691_p5)
}
  0x23   : > { %s695_s27 = scalar_lea.vmem %s987_s12, 128  ;;  %s888_s28 = smov [#allocation5]  }
  0x24   : > { %p696_p6 = scmp.ne.s32.totalorder %s987_s12, %s695_s27  ;;  %s700_s7 = sshll.u32 %s888_s28, 4  ;;  %s701_s7 = int_to_ptr.vmem [resolvable:$false] %s700_s7 }
  0x25   : > { %s702_s8 = scalar_lea.vmem %s701_s7, 256  ;;  %p703_p3 = scmp.lt.s32.totalorder %s987_s12, %s701_s7 }
  0x26   : > { %p698_p8 = pnand %p696_p6, %p682_p9  ;;  %p704_p12 = scmp.lt.s32.totalorder %s702_s8, %s695_s27 }
  0x28   : > { %p699_p10 = pneg %p698_p8  ;;  %p705_p13 = por %p704_p12, %p703_p3 }
  0x2a   : > { %p706_p0 = pnand %p705_p13, %p699_p10 }
  0x2c   : > { %709 = shalt.err (!%p706_p0)
}
  0x2d   : > { %615 = dma.hbm_to_vmem [thread:$0]  (!%p982_p7), %s980_s9, 128, %s987_s12, %s989_s13  }
  0x2e   : > { %s1018_s11 = sadd.s32 4294967295, %s886_s23   ;;  %s575_s14 = sadd.s32 4294967294, %s886_s23  }
  0x2f   : > { %p112_p3 = scmp.ne.s32.totalorder %s870_s19, %s866_s18  ;;  %p1214_p11 = scmp.eq.s32.totalorder %s1018_s11, 0 }
  0x30   : > { %p164_p2 = scmp.eq.s32.totalorder %s1018_s11, 1  ;;  %p170_p4 = scmp.eq.s32.totalorder %s575_s14, 1 }
  0x31   : > { %p576_p5 = scmp.ge.s32.totalorder %s886_s23, 1  ;;  %p1028_p6 = por %p1214_p11, %p112_p3 }
  0x32   : > { %p1035_p8 = por %p164_p2, %p106_p1  ;;  %p1039_p10 = por %p170_p4, %p112_p3 }
  0x33   : > { %s1223_s15 = scalar_select %p1028_p6, 1, 0 }
  0x34   : > { %s1224_s9 = scalar_select %p1035_p8, 1, 0 }
  0x35   : > { %s1225_s12 = scalar_select %p1039_p10, 1, 0 }
  0x36   : > { %p205_p12 = scmp.lt.s32.totalorder %s886_s23, 3  ;;  %s1049_s25 = scalar_lea.hbm %s1210_s3, %s581_s29 }
  0x37   : > { %s889_s27 = smov [#allocation2]   ;;  %s260_s7 = scalar_lea.vmem [#allocation7], %s973_s6 }
  0x38   : > { %p1051_p13 = pnand %p576_p5, %p205_p12  ;;  %s1055_s28 = sshll.u32 %s889_s27, 4  ;;  %s221_s28 = int_to_ptr.vmem [resolvable:$true] %s1055_s28 }
  0x39   : > { %s268_s8 = sshll.u32 %s260_s7, 4  ;;  %s710_s14 = scalar_lea.hbm %s1049_s25, 128  ;;  %s269_s8 = int_to_ptr.vmem [resolvable:$true] %s268_s8 }
  0x3a   : > { %s1226_s26 = scalar_select %p1051_p13, 1, 0 }
  0x3b   : > { %p711_p0 = scmp.ne.s32.totalorder %s1049_s25, %s710_s14  ;;  %s715_s17 = scalar_lea.hbm %s1210_s3, 256 }
  0x3c   : > { %p716_p4 = scmp.lt.u32.totalorder %s1049_s25, %s1210_s3  ;;  %p717_p5 = scmp.lt.u32.totalorder %s715_s17, %s710_s14 }
  0x3d   : > { %p713_p3 = pnand %p711_p0, %p682_p9  ;;  %p719_p11 = scmp.lt.u32.totalorder %s710_s14, %s1049_s25 }
  0x3e   : > { %p718_p12 = por %p717_p5, %p716_p4 }
  0x3f   : > { %p714_p2 = pneg %p713_p3 }
  0x40   : > { %p720_p10 = por %p719_p11, %p718_p12 }
  0x42   : > { %p721_p1 = pnand %p720_p10, %p714_p2 }
  0x44   : > { %724 = shalt.err (!%p721_p1)
}
  0x45   : > { %s725_s6 = scalar_lea.vmem %s269_s8, 128  ;;  %s890_s27 = smov [#allocation7]  }
  0x46   : > { %p726_p8 = scmp.ne.s32.totalorder %s269_s8, %s725_s6  ;;  %s730_s7 = sshll.u32 %s890_s27, 4  ;;  %s731_s7 = int_to_ptr.vmem [resolvable:$false] %s730_s7 }
  0x47   : > { %s732_s29 = scalar_lea.vmem %s731_s7, 256  ;;  %p733_p6 = scmp.lt.s32.totalorder %s269_s8, %s731_s7 }
  0x48   : > { %p728_p0 = pnand %p726_p8, %p682_p9  ;;  %p734_p13 = scmp.lt.s32.totalorder %s732_s29, %s725_s6 }
  0x4a   : > { %p729_p3 = pneg %p728_p0  ;;  %p735_p4 = por %p734_p13, %p733_p6 }
  0x4c   : > { %p736_p5 = pnand %p735_p4, %p729_p3 }
  0x4e   : > { %739 = shalt.err (!%p736_p5)
}
  0x4f   : > { %618 = dma.hbm_to_vmem [thread:$0]  (!%p982_p7), %s1049_s25, 128, %s269_s8, %s989_s13  }
  0x50   : > { %p1227_p9 = scmp.eq.s32.totalorder %s1018_s11, 0  ;;  %p1228_p11 = scmp.ne.s32.totalorder %s1226_s26, 0 }
  0x51   : > { %s740_s16 = scalar_lea.hbm %s1207_s0, 16 }
  0x52   : > { %p1229_p8 = pneg %p1228_p11  ;;  %p741_p6 = scmp.ne.s32.totalorder %s1207_s0, %s740_s16 }
  0x53   : > { %p747_p2 = scmp.lt.u32.totalorder %s740_s16, %s1207_s0 }
  0x54   : > { %p1086_p10 = pnand %p1229_p8, %p1227_p9 }
  0x56   : > { %p742_p13 = pneg %p1086_p10 }
  0x58   : > { %p743_p7 = pnand %p742_p13, %p741_p6 }
  0x5a   : > { %p744_p1 = pneg %p743_p7 }
  0x5c   : > { %p749_p12 = pnand %p747_p2, %p744_p1 }
  0x5e   : > { %752 = shalt.err (!%p749_p12)
}
  0x5f   : > { %s753_s8 = scalar_lea.vmem %s221_s28, 16  ;;  %s760_s6 = scalar_lea.vmem %s221_s28, 32 }
  0x60   : > { %p754_p0 = scmp.ne.s32.totalorder %s221_s28, %s753_s8  ;;  %p761_p5 = scmp.lt.s32.totalorder %s221_s28, %s221_s28 }
  0x61   : > { %p762_p9 = scmp.lt.s32.totalorder %s760_s6, %s753_s8 }
  0x62   : > { %p756_p3 = pnand %p754_p0, %p742_p13 }
  0x63   : > { %p763_p8 = por %p762_p9, %p761_p5 }
  0x64   : > { %p757_p4 = pneg %p756_p3 }
  0x66   : > { %p764_p11 = pnand %p763_p8, %p757_p4 }
  0x68   : > { %767 = shalt.err (!%p764_p11)
}
  0x69   : > { %611 = dma.hbm_to_vmem [thread:$0]  (!%p1086_p10), %s1207_s0, 16, %s221_s28, [#allocation3]  }
  0x6a   : > { %p1231_p6 = scmp.ne.s32.totalorder %s1226_s26, 0 }
  0x6b   : > { %p1232_p7 = scmp.eq.s32.totalorder (!%p1231_p6), %s1018_s11, 0 }
  0x6c   : > { %277 = sbr.rel (%p1231_p6) target bundleno = 287 (0x11f), region = 36 }
  0x73   : > { %849 = dma.done.wait (%p1232_p7), [#allocation3], 16   ;;  %p1233_p13 = pmov %p1232_p7 }
  0x74   : > { %s283_s29 = sand.u32 1, %s1018_s11   ;;  %s1114_s24 = sand.u32 1, %s870_s19  }
  0x75   : > { %851 = vsyncadd (%p1233_p13), [#allocation3], 4294967280  ;;  %s1117_s2 = sshll.u32 %s1114_s24, 3  ;;  %s284_s28 = scalar_lea.sflag [#allocation6], %s283_s29 }
  0x76   : > { %s287_s14 = scalar_lea.vmem [#allocation5], %s1117_s2  ;;  %p1234_p11 = scmp.ne.s32.totalorder %s1223_s15, 0 }
  0x78   : > { %853 = dma.done.wait (%p1234_p11), %s284_s28, 256  }
  0x79   : > { %855 = vsyncadd (%p1234_p11), %s284_s28, 4294967040  ;;  %s296_s26 = scalar_lea.vmem [#allocation7], %s1117_s2  ;;  %v590_v1 = vld [vmem:[%s1208_s1] ss:$0 sm:$0xff]  ;;  %v343_v4 = vld [vmem:[%s287_s14] sm:$0xff]  ;;  %s334_s11 = scalar_lea.vmem [#allocation9], %s1114_s24 }
  0x7a   : > { %v344_v0 = vld [vmem:[%s296_s26] sm:$0xff]  ;;  %s593_s15 = sshll.u32 %s878_s21, 4  ;;  %s419_s17 = sshll.u32 %s334_s11, 4  ;;  %s420_s17 = int_to_ptr.vmem [resolvable:$true] %s419_s17 }
  0x7b   : > { %v589_v2 = vld [vmem:[#allocation2] ss:$0 sm:$0xff]  ;;  %v365_v3 = vmul.f32 %v590_v1, %v344_v0  ;;  %v379_v6 = vsub.f32 %v343_v4, %v344_v0  ;;  %s1133_s8 = scalar_lea.hbm %s1212_s5, %s593_s15  ;;  %s393_s6 = scalar_lea.sflag [#allocation10], %s1114_s24 }
  0x7c   : > { %v353_v5 = vmul.f32 %v589_v2, %v343_v4  ;;  %v356_v7 = vmul.f32 %v589_v2, %v344_v0  ;;  %s768_s27 = scalar_lea.vmem %s420_s17, 16  ;;  %p1235_p1 = scmp.ne.s32.totalorder %s1224_s9, 0 }
  0x7d   : > { %366 = vadd.xlane.f32.xlu0 %v365_v3  ;;  %v380_v8 = vrot.slane %v379_v6, 4  ;;  %p769_p10 = scmp.ne.s32.totalorder %s420_s17, %s768_s27  ;;  %s891_s7 = smov [#allocation9]  }
  0x7e   : > { %354 = vadd.xlane.f32.xlu1 %v353_v5  ;;  %s772_s29 = sshll.u32 %s891_s7, 4  ;;  %s773_s29 = int_to_ptr.vmem [resolvable:$false] %s772_s29 }
  0x7f   : > { %v381_v9 = vadd.f32 %v380_v8, %v379_v6  ;;  %p770_p2 = pnand %p769_p10, %p1235_p1  ;;  %s774_s28 = scalar_lea.vmem %s773_s29, 32 }
  0x80   : > { %p775_p0 = scmp.lt.s32.totalorder %s420_s17, %s773_s29  ;;  %p776_p3 = scmp.lt.s32.totalorder %s774_s28, %s768_s27 }
  0x81   : > { %357 = vadd.xlane.f32.xlu0 %v356_v7  ;;  %v382_v10 = vrot.slane %v381_v9, 2  ;;  %p771_p12 = pneg %p770_p2 }
  0x82   : > { %p777_p4 = por %p776_p3, %p775_p0 }
  0x83   : > { %v383_v11 = vadd.f32 %v382_v10, %v381_v9 }
  0x84   : > { %p778_p5 = pnand %p777_p4, %p771_p12 }
  0x85   : > { %v384_v12 = vrot.slane %v383_v11, 1 }
  0x87   : > { %v385_v13 = vadd.f32 %v384_v12, %v383_v11 }
  0x89   : > { %386 = vst [vmem:[%s334_s11] sm:$0x1] %v385_v13 }
  0x8a   : > { %781 = shalt.err (!%p778_p5)
}
  0x8b   : > { %s782_s14 = scalar_lea.hbm %s1133_s8, 16  ;;  %s786_s10 = scalar_lea.hbm %s1212_s5, 32 }
  0x8c   : > { %p783_p9 = scmp.ne.s32.totalorder %s1133_s8, %s782_s14  ;;  %p787_p7 = scmp.lt.u32.totalorder %s1133_s8, %s1212_s5 }
  0x8d   : > { %p788_p13 = scmp.lt.u32.totalorder %s786_s10, %s782_s14  ;;  %p790_p10 = scmp.lt.u32.totalorder %s782_s14, %s1133_s8 }
  0x8e   : > { %p784_p8 = pnand %p783_p9, %p1235_p1 }
  0x8f   : > { %p789_p11 = por %p788_p13, %p787_p7 }
  0x90   : > { %p785_p6 = pneg %p784_p8 }
  0x91   : > { %p791_p2 = por %p790_p10, %p789_p11 }
  0x93   : > { %p792_p12 = pnand %p791_p2, %p785_p6 }
  0x95   : > { %795 = shalt.err (!%p792_p12)
}
  0x96   : > { %605 = dma.vmem_to_hbm [thread:$0]  (%p1235_p1), %s420_s17, 16, %s1133_s8, %s393_s6   ;;  %v368_v14 = vlaneseq }
  0x97   : > { %s592_s13 = sshll.u32 %s878_s21, 7  ;;  %s328_s25 = scalar_lea.vmem [#allocation8], %s1117_s2 }
  0x98   : > { %v369_v15 = vand.u32 127, %v368_v14  ;;  %s405_s27 = sshll.u32 %s328_s25, 4  ;;  %s1158_s17 = scalar_lea.hbm %s1211_s4, %s592_s13  ;;  %s1160_s27 = int_to_ptr.vmem [resolvable:$true] %s405_s27 }
  0x99   : > { %s388_s8 = scalar_lea.sflag [#allocation4], %s1114_s24  ;;  %s796_s6 = scalar_lea.vmem %s1160_s27, 128 }
  0x9a   : > { %vm372_vm0 = vcmp.eq.s32.totalorder %v369_v15, 2  ;;  %vm371_vm1 = vcmp.eq.s32.totalorder %v369_v15, 1  ;;  %vm370_vm2 = vcmp.eq.s32.totalorder %v369_v15, 0  ;;  %p797_p0 = scmp.ne.s32.totalorder %s1160_s27, %s796_s6  ;;  %s892_s21 = smov [#allocation8]  }
  0x9b   : > { %s800_s2 = sshll.u32 %s892_s21, 4  ;;  %s801_s2 = int_to_ptr.vmem [resolvable:$false] %s800_s2 }
  0x9c   : > { %p798_p3 = pnand %p797_p0, %p1235_p1  ;;  %s802_s28 = scalar_lea.vmem %s801_s2, 256 }
  0x9d   : > { %p803_p5 = scmp.lt.s32.totalorder %s1160_s27, %s801_s2  ;;  %p804_p9 = scmp.lt.s32.totalorder %s802_s28, %s796_s6 }
  0x9e   : > { %p799_p4 = pneg %p798_p3 }
  0x9f   : > { %p805_p8 = por %p804_p9, %p803_p5 }
  0xa1   : > { %p806_p6 = pnand %p805_p8, %p799_p4 }
 0x10a   : > { %v367_v16 = vpop.xlane.xlu0 %366 }
 0x10b   : > { %v355_v17 = vpop.xlane.xlu1 %354  ;;  %v373_v18 = vsel %vm372_vm0, %v367_v16, 0.0 }
 0x10e   : > { %v358_v19 = vpop.xlane.xlu0 %357 }
 0x10f   : > { %v374_v20 = vsel %vm371_vm1, %v358_v19, %v373_v18 }
 0x110   : > { %v375_v21 = vsel %vm370_vm2, %v355_v17, %v374_v20 }
 0x111   : > { %378 = vst [vmem:[%s328_s25] sm:$0xff] %v375_v21 }
 0x112   : > { %809 = shalt.err (!%p806_p6)
}
 0x113   : > { %s810_s24 = scalar_lea.hbm %s1158_s17, 128  ;;  %s814_s16 = scalar_lea.hbm %s1211_s4, 256 }
 0x114   : > { %p811_p7 = scmp.ne.s32.totalorder %s1158_s17, %s810_s24  ;;  %p815_p10 = scmp.lt.u32.totalorder %s1158_s17, %s1211_s4 }
 0x115   : > { %p816_p2 = scmp.lt.u32.totalorder %s814_s16, %s810_s24  ;;  %p818_p0 = scmp.lt.u32.totalorder %s810_s24, %s1158_s17 }
 0x116   : > { %p812_p13 = pnand %p811_p7, %p1235_p1 }
 0x117   : > { %p817_p12 = por %p816_p2, %p815_p10 }
 0x118   : > { %p813_p11 = pneg %p812_p13 }
 0x119   : > { %p819_p3 = por %p818_p0, %p817_p12 }
 0x11b   : > { %p820_p4 = pnand %p819_p3, %p813_p11 }
 0x11d   : > { %823 = shalt.err (!%p820_p4)
}
 0x11e   : > { %604 = dma.vmem_to_hbm [thread:$0]  (%p1235_p1), %s1160_s27, 128, %s1158_s17, %s388_s8  }
 0x11f PF: > { %s431_s15 = sand.u32 1, %s866_s18   ;;  %p1236_p5 = scmp.ne.s32.totalorder %s1225_s12, 0 }
 0x120   : > { %p1237_p9 = scmp.ge.s32.totalorder %s886_s23, 2  ;;  %s432_s13 = scalar_lea.sflag [#allocation4], %s431_s15 }
 0x122   : > { %p620_p8 = pnand %p1237_p9, %p1236_p5 }
 0x124   : > { %857 = dma.done.wait (!%p620_p8), %s432_s13, 128  }
 0x125   : > { %859 = vsyncadd (!%p620_p8), %s432_s13, 4294967168  ;;  %s441_s25 = scalar_lea.sflag [#allocation10], %s431_s15 }
 0x126   : > { %861 = dma.done.wait (!%p620_p8), %s441_s25, 16  }
 0x127   : > { %863 = vsyncadd (!%p620_p8), %s441_s25, 4294967280  ;;  %s26_s23 = sadd.s32 1, %s886_s23   ;;  %s1238_s9 = sld [smem:[#allocation15_spill]] }
 0x128   : > { %p23_p6 = scmp.ge.s32.totalorder %s26_s23, 4   ;;  %s1239_s18 = smov %s870_s19 }
 0x129   : > { %s1240_s19 = smov %s874_s20  ;;  %s1241_s20 = smov %s971_s30 }
 0x12a   : > { %s1242_s21 = smov %s882_s22  ;;  %25 = sbr.rel (!%p23_p6) target bundleno = 11 (0xb), region = 122 }
 0x12d   : > { %s1243_s22 = smov %s1238_s9 }
 0x131   :  { %445 = vsyncpa [#allocation3], 1 }
 0x132   :  { %447 = vsyncpa [#allocation3 + $0x1], 1 }
 0x133   :  { %448 = vsyncpa [#allocation6], 1 }
 0x134   :  { %450 = vsyncpa [#allocation6 + $0x1], 1 }
 0x135   :  { %451 = vsyncpa [#allocation4], 1 }
 0x136   :  { %453 = vsyncpa [#allocation4 + $0x1], 1 }
 0x137   :  { %454 = vsyncpa [#allocation10], 1 }
 0x138   :  { %456 = vsyncpa [#allocation10 + $0x1], 1 }

</bundles_post_ra>
